<compile_context>
chip_gen: v7x
topology: tpu7x:2x2x1
jax: 0.10.0
libtpu: 0.0.40
codegen_flags: <defaults>
</compile_context>

<pallas_src>
import functools
import math

import jax
import jax.numpy as jnp
from jax import lax
from jax.experimental import pallas as pl
from jax.experimental.pallas import tpu as pltpu  # noqa: F401  (kept for TPU-specific tuning hooks)
import numpy as np

# ----------------------------- hyper params ---------------------------------
B = 2          # batch
N = 8          # sequence length
D_M = 32       # model dim
NUM_HEADS = 4
D_K = D_M // NUM_HEADS
D_V = D_M // NUM_HEADS
FF_EXP = 4
D_FF = D_M * FF_EXP
LN_EPS = 1e-5

# Set to jnp.bfloat16 on v6e/v7x at realistic D_M/D_FF (accumulation stays f32
# via preferred_element_type; all elementwise math stays f32, which is also the
# right choice on v5e). The correctness tolerance in __main__ adapts.
MATMUL_DTYPE = jnp.float32
NEG_INF = -1e30


# ------------------------------- kernel --------------------------------------
def encoder_block_kernel(
    x_ref,        # (T, D_M)          flattened tokens, f32
    bias_ref,     # (T, T)            additive attention bias (block-diag batch mask)
    wqkv_ref,     # (H, D_M, 3*D_K)   fused per-head QKV projection
    wo_ref,       # (H, D_V, D_M)     per-head output projection
    gamma_ref,    # (1, D_M)
    beta_ref,     # (1, D_M)
    w1_ref,       # (D_M, D_FF)
    b1_ref,       # (1, D_FF)
    w2_ref,       # (D_FF, D_M)
    b2_ref,       # (1, D_M)
    out_ref,      # (T, D_M)
    *, mm_dtype,
):
    x = x_ref[...]                               # (T, D_M), f32
    gamma = gamma_ref[...]
    beta = beta_ref[...]

    num_heads = wqkv_ref.shape[0]
    d_k = wqkv_ref.shape[2] // 3
    t, d_m = x.shape
    scale = 1.0 / math.sqrt(d_k)

    def ln(v):                                   # LayerNorm, f32 (shared gamma/beta)
        mu = jnp.mean(v, axis=-1, keepdims=True)
        var = jnp.mean((v - mu) ** 2, axis=-1, keepdims=True)
        return (v - mu) * lax.rsqrt(var + LN_EPS) * gamma + beta

    mm = lambda a: a.astype(mm_dtype)            # cast only at the MXU boundary

    # ---- fused QKV projection, heads as the leading batch dim -------------
    xb = jnp.broadcast_to(mm(x)[None], (num_heads, t, d_m))          # (H, T, D_M)
    qkv = jnp.einsum('htd,hdc->htc', xb, wqkv_ref[...],
                     preferred_element_type=jnp.float32)             # (H, T, 3*d_k)
    q = qkv[:, :, 0 * d_k:1 * d_k]
    k = qkv[:, :, 1 * d_k:2 * d_k]
    v = qkv[:, :, 2 * d_k:3 * d_k]

    # ---- scaled dot-product attention (no .T, no concat, no per-head loop) --
    s = jnp.einsum('hmk,hnk->hmn', mm(q), mm(k),
                   preferred_element_type=jnp.float32) * scale       # (H, T, T)
    s = s + bias_ref[...]          # -1e30 across batch elements -> exp underflows to 0
    s_max = jnp.max(s, axis=-1, keepdims=True)
    e = jnp.exp(s - s_max)
    p = e / jnp.sum(e, axis=-1, keepdims=True)                       # f32 softmax
    ctx = jnp.einsum('hmn,hnv->hmv', mm(p), mm(v),
                     preferred_element_type=jnp.float32)             # (H, T, d_v)

    # ---- output projection: concat_h(ctx_h) @ W_o == sum_h ctx_h @ W_o[h] ---
    proj = jnp.einsum('hmv,hvd->hmd', mm(ctx), wo_ref[...],
                      preferred_element_type=jnp.float32)            # (H, T, D_M)
    attn_out = jnp.sum(proj, axis=0)                                 # (T, D_M)

    # ---- add & norm (dropout = identity in eval) ----------------------------
    x1 = ln(attn_out + x)

    # ---- feed forward --------------------------------------------------------
    h = jnp.dot(mm(x1), w1_ref[...],
                preferred_element_type=jnp.float32) + b1_ref[...]
    h = jnp.maximum(h, 0.0)
    ff = jnp.dot(mm(h), w2_ref[...],
                 preferred_element_type=jnp.float32) + b2_ref[...]

    # ---- add & norm ----------------------------------------------------------
    out_ref[...] = ln(ff + x1)


# ------------------------------- wrapper --------------------------------------
def _pack_params(params):
    """Re-pack logical (x @ W) weights for the kernel — wrapper-side, free."""
    (wq, wk, wv, wo, gamma, beta, w1, b1, w2, b2) = params
    d_m = wq.shape[0]
    d_k = wq.shape[1] // NUM_HEADS
    d_v = wv.shape[1] // NUM_HEADS
    per_head = lambda w, d: w.reshape(d_m, NUM_HEADS, d).transpose(1, 0, 2)
    wqkv = jnp.concatenate(
        [per_head(wq, d_k), per_head(wk, d_k), per_head(wv, d_v)], axis=-1)
    wo3 = wo.reshape(NUM_HEADS, d_v, d_m)
    return (wqkv.astype(MATMUL_DTYPE), wo3.astype(MATMUL_DTYPE),
            gamma, beta,
            w1.astype(MATMUL_DTYPE), b1, w2.astype(MATMUL_DTYPE), b2)


@jax.jit
def encoder_block(x, params):
    b, n, d_m = x.shape
    t = b * n
    x2 = x.reshape(t, d_m)                       # wrapper-side flatten (free)

    # Additive attention bias: 0 within a batch element, -1e30 across batch
    # elements, so one kernel step can attend over the whole flattened slab.
    # TODO(synk): fold an optional user self-attention mask into this bias.
    tok_batch = jnp.arange(t, dtype=jnp.int32) // n
    bias = jnp.where(tok_batch[:, None] == tok_batch[None, :],
                     0.0, NEG_INF).astype(jnp.float32)

    out2 = pl.pallas_call(
        functools.partial(encoder_block_kernel, mm_dtype=MATMUL_DTYPE),
        out_shape=jax.ShapeDtypeStruct((t, d_m), jnp.float32),
        # Single invocation (no grid): the whole (B*N, D_M) slab + all weights
        # fit trivially in VMEM, and a 1-step call avoids the per-grid-step
        # overhead that dominated the old grid=(B,) version.
        # TODO(synk): at realistic D_M/D_FF, tile tokens / D_FF with a grid and
        # a VMEM accumulator (v7x has only 64 MiB VMEM) and keep the output
        # tile's last dim a multiple of 128 for unmasked stores.
    )(x2, bias, *_pack_params(params))
    return out2.reshape(b, n, d_m)


# --------------------------- pure-JAX reference --------------------------------
def _mha_ref(q, kv, wq, wk, wv, wo, num_heads):
    b, m, _ = q.shape
    n = kv.shape[1]
    d_k = wq.shape[1] // num_heads
    d_v = wv.shape[1] // num_heads
    Q = (q @ wq).reshape(b, m, num_heads, d_k).transpose(0, 2, 1, 3)
    K = (kv @ wk).reshape(b, n, num_heads, d_k).transpose(0, 2, 1, 3)
    V = (kv @ wv).reshape(b, n, num_heads, d_v).transpose(0, 2, 1, 3)
    att = jnp.einsum('bhmk,bhnk->bhmn', Q, K) / math.sqrt(d_k)
    att = jax.nn.softmax(att, axis=-1)
    out = jnp.einsum('bhmn,bhnv->bhmv', att, V)
    out = out.transpose(0, 2, 1, 3).reshape(b, m, num_heads * d_v)
    return out @ wo


def _ln_ref(v, gamma, beta):
    mu = jnp.mean(v, axis=-1, keepdims=True)
    var = jnp.mean((v - mu) ** 2, axis=-1, keepdims=True)
    return (v - mu) / jnp.sqrt(var + LN_EPS) * gamma + beta


def encoder_block_ref(x, params):
    (wq, wk, wv, wo, gamma, beta, w1, b1, w2, b2) = params
    sa = _mha_ref(x, x, wq, wk, wv, wo, NUM_HEADS)
    x1 = _ln_ref(sa + x, gamma, beta)
    ff = jnp.maximum(x1 @ w1 + b1, 0.0) @ w2 + b2
    return _ln_ref(ff + x1, gamma, beta)


# --------------------------------- main ----------------------------------------
if __name__ == "__main__":
    key = jax.random.PRNGKey(0)
    keys = jax.random.split(key, 9)

    def w(k, shape, fan_in):
        return jax.random.normal(k, shape, jnp.float32) / math.sqrt(fan_in)

    params = (
        w(keys[0], (D_M, NUM_HEADS * D_K), D_M),               # wq  (used as x @ wq)
        w(keys[1], (D_M, NUM_HEADS * D_K), D_M),               # wk
        w(keys[2], (D_M, NUM_HEADS * D_V), D_M),               # wv
        w(keys[3], (NUM_HEADS * D_V, D_M), NUM_HEADS * D_V),   # wo
        jnp.ones((1, D_M), jnp.float32),                       # shared LayerNorm gamma
        jnp.zeros((1, D_M), jnp.float32),                      # shared LayerNorm beta
        w(keys[4], (D_M, D_FF), D_M),                          # ff w1
        0.01 * jax.random.normal(keys[5], (1, D_FF), jnp.float32),  # ff b1
        w(keys[6], (D_FF, D_M), D_FF),                         # ff w2
        0.01 * jax.random.normal(keys[7], (1, D_M), jnp.float32),   # ff b2
    )

    x = jax.random.normal(keys[8], (B, N, D_M), jnp.float32)

    out = jax.block_until_ready(encoder_block(x, params))
    ref = encoder_block_ref(x, params)

    tol = 1e-4 if MATMUL_DTYPE == jnp.float32 else 5e-2
    np.testing.assert_allclose(np.asarray(out), np.asarray(ref), rtol=tol, atol=tol)
    print("KERNEL_OK")
</pallas_src>

<mosaic_0001>
module attributes {stable_mosaic.version = 11 : i64} {
  func.func @encoder_block_kernel(%arg0: memref<16x32xf32, #tpu.memory_space<vmem>>, %arg1: memref<16x16xf32, #tpu.memory_space<vmem>>, %arg2: memref<4x32x24xf32, #tpu.memory_space<vmem>>, %arg3: memref<4x8x32xf32, #tpu.memory_space<vmem>>, %arg4: memref<1x32xf32, #tpu.memory_space<vmem>>, %arg5: memref<1x32xf32, #tpu.memory_space<vmem>>, %arg6: memref<32x128xf32, #tpu.memory_space<vmem>>, %arg7: memref<1x128xf32, #tpu.memory_space<vmem>>, %arg8: memref<128x32xf32, #tpu.memory_space<vmem>>, %arg9: memref<1x32xf32, #tpu.memory_space<vmem>>, %arg10: memref<16x32xf32, #tpu.memory_space<vmem>>) attributes {dimension_semantics = [], scalar_prefetch = 0 : i64, scratch_operands = 0 : i64, tpu.core_type = #tpu.core_type<tc>} {
    %c0 = arith.constant 0 : index
    %c0_0 = arith.constant 0 : index
    %0 = vector.load %arg0[%c0, %c0_0] : memref<16x32xf32, #tpu.memory_space<vmem>>, vector<16x32xf32>
    %c0_1 = arith.constant 0 : index
    %c0_2 = arith.constant 0 : index
    %1 = vector.load %arg4[%c0_1, %c0_2] : memref<1x32xf32, #tpu.memory_space<vmem>>, vector<1x32xf32>
    %c0_3 = arith.constant 0 : index
    %c0_4 = arith.constant 0 : index
    %2 = vector.load %arg5[%c0_3, %c0_4] : memref<1x32xf32, #tpu.memory_space<vmem>>, vector<1x32xf32>
    %3 = vector.shape_cast %0 : vector<16x32xf32> to vector<1x16x32xf32>
    %4 = vector.shape_cast %3 : vector<1x16x32xf32> to vector<1x16x32xf32>
    %5 = vector.broadcast %4 : vector<1x16x32xf32> to vector<4x16x32xf32>
    %c0_5 = arith.constant 0 : index
    %c0_6 = arith.constant 0 : index
    %c0_7 = arith.constant 0 : index
    %6 = vector.load %arg2[%c0_5, %c0_6, %c0_7] : memref<4x32x24xf32, #tpu.memory_space<vmem>>, vector<4x32x24xf32>
    "tpu.trace_start"() <{level = 10 : i32, message = "htd,hdc->htc"}> : () -> ()
    %cst = arith.constant dense<0.000000e+00> : vector<4x16x24xf32>
    %7 = tpu.matmul %5, %6, %cst {dimension_numbers = #tpu.dot_dimension_numbers<[2], [1], [1], [2], [0, 0, 0, 1, 1, 2], [0], [0]>} : vector<4x16x32xf32>, vector<4x32x24xf32>, vector<4x16x24xf32> -> vector<4x16x24xf32>
    "tpu.trace_stop"() : () -> ()
    %8 = vector.extract_strided_slice %7 {offsets = [0, 0, 0], sizes = [4, 16, 8], strides = [1, 1, 1]} : vector<4x16x24xf32> to vector<4x16x8xf32>
    %9 = vector.extract_strided_slice %7 {offsets = [0, 0, 8], sizes = [4, 16, 8], strides = [1, 1, 1]} : vector<4x16x24xf32> to vector<4x16x8xf32>
    %10 = vector.extract_strided_slice %7 {offsets = [0, 0, 16], sizes = [4, 16, 8], strides = [1, 1, 1]} : vector<4x16x24xf32> to vector<4x16x8xf32>
    "tpu.trace_start"() <{level = 10 : i32, message = "hmk,hnk->hmn"}> : () -> ()
    %cst_8 = arith.constant dense<0.000000e+00> : vector<4x16x16xf32>
    %11 = tpu.matmul %8, %9, %cst_8 {dimension_numbers = #tpu.dot_dimension_numbers<[2], [2], [1], [1], [0, 0, 0, 1, 1, 1], [0], [0]>} : vector<4x16x8xf32>, vector<4x16x8xf32>, vector<4x16x16xf32> -> vector<4x16x16xf32>
    "tpu.trace_stop"() : () -> ()
    %cst_9 = arith.constant 0.353553385 : f32
    %12 = vector.broadcast %cst_9 : f32 to vector<4x16x16xf32>
    %13 = arith.mulf %11, %12 : vector<4x16x16xf32>
    %c0_10 = arith.constant 0 : index
    %c0_11 = arith.constant 0 : index
    %14 = vector.load %arg1[%c0_10, %c0_11] : memref<16x16xf32, #tpu.memory_space<vmem>>, vector<16x16xf32>
    %15 = vector.shape_cast %14 : vector<16x16xf32> to vector<1x16x16xf32>
    %16 = vector.broadcast %15 : vector<1x16x16xf32> to vector<4x16x16xf32>
    %17 = arith.addf %13, %16 : vector<4x16x16xf32>
    %cst_12 = arith.constant dense<0xFF800000> : vector<4x16xf32>
    %18 = vector.multi_reduction <maximumf>, %17, %cst_12 [2] : vector<4x16x16xf32> to vector<4x16xf32>
    %19 = vector.shape_cast %18 : vector<4x16xf32> to vector<4x16x1xf32>
    %20 = vector.broadcast %19 : vector<4x16x1xf32> to vector<4x16x16xf32>
    %21 = arith.subf %17, %20 : vector<4x16x16xf32>
    %22 = math.exp %21 : vector<4x16x16xf32>
    %cst_13 = arith.constant dense<0.000000e+00> : vector<4x16xf32>
    %23 = vector.multi_reduction <add>, %22, %cst_13 [2] : vector<4x16x16xf32> to vector<4x16xf32>
    %24 = vector.shape_cast %23 : vector<4x16xf32> to vector<4x16x1xf32>
    %25 = vector.broadcast %24 : vector<4x16x1xf32> to vector<4x16x16xf32>
    %26 = arith.divf %22, %25 : vector<4x16x16xf32>
    "tpu.trace_start"() <{level = 10 : i32, message = "hmn,hnv->hmv"}> : () -> ()
    %cst_14 = arith.constant dense<0.000000e+00> : vector<4x16x8xf32>
    %27 = tpu.matmul %26, %10, %cst_14 {dimension_numbers = #tpu.dot_dimension_numbers<[2], [1], [1], [2], [0, 0, 0, 1, 1, 2], [0], [0]>} : vector<4x16x16xf32>, vector<4x16x8xf32>, vector<4x16x8xf32> -> vector<4x16x8xf32>
    "tpu.trace_stop"() : () -> ()
    %c0_15 = arith.constant 0 : index
    %c0_16 = arith.constant 0 : index
    %c0_17 = arith.constant 0 : index
    %28 = vector.load %arg3[%c0_15, %c0_16, %c0_17] : memref<4x8x32xf32, #tpu.memory_space<vmem>>, vector<4x8x32xf32>
    "tpu.trace_start"() <{level = 10 : i32, message = "hmv,hvd->hmd"}> : () -> ()
    %cst_18 = arith.constant dense<0.000000e+00> : vector<4x16x32xf32>
    %29 = tpu.matmul %27, %28, %cst_18 {dimension_numbers = #tpu.dot_dimension_numbers<[2], [1], [1], [2], [0, 0, 0, 1, 1, 2], [0], [0]>} : vector<4x16x8xf32>, vector<4x8x32xf32>, vector<4x16x32xf32> -> vector<4x16x32xf32>
    "tpu.trace_stop"() : () -> ()
    %cst_19 = arith.constant dense<0.000000e+00> : vector<16x32xf32>
    %30 = vector.multi_reduction <add>, %29, %cst_19 [0] : vector<4x16x32xf32> to vector<16x32xf32>
    %31 = arith.addf %30, %0 : vector<16x32xf32>
    %cst_20 = arith.constant dense<0.000000e+00> : vector<16xf32>
    %32 = vector.multi_reduction <add>, %31, %cst_20 [1] : vector<16x32xf32> to vector<16xf32>
    %33 = vector.shape_cast %32 : vector<16xf32> to vector<16x1xf32>
    %cst_21 = arith.constant 3.200000e+01 : f32
    %34 = vector.broadcast %cst_21 : f32 to vector<16x1xf32>
    %35 = arith.divf %33, %34 : vector<16x1xf32>
    %36 = vector.broadcast %35 : vector<16x1xf32> to vector<16x32xf32>
    %37 = arith.subf %31, %36 : vector<16x32xf32>
    %38 = arith.mulf %37, %37 : vector<16x32xf32>
    %cst_22 = arith.constant dense<0.000000e+00> : vector<16xf32>
    %39 = vector.multi_reduction <add>, %38, %cst_22 [1] : vector<16x32xf32> to vector<16xf32>
    %40 = vector.shape_cast %39 : vector<16xf32> to vector<16x1xf32>
    %cst_23 = arith.constant 3.200000e+01 : f32
    %41 = vector.broadcast %cst_23 : f32 to vector<16x1xf32>
    %42 = arith.divf %40, %41 : vector<16x1xf32>
    %43 = vector.broadcast %35 : vector<16x1xf32> to vector<16x32xf32>
    %44 = arith.subf %31, %43 : vector<16x32xf32>
    %cst_24 = arith.constant 9.99999974E-6 : f32
    %45 = vector.broadcast %cst_24 : f32 to vector<16x1xf32>
    %46 = arith.addf %42, %45 : vector<16x1xf32>
    %47 = math.rsqrt %46 : vector<16x1xf32>
    %48 = vector.broadcast %47 : vector<16x1xf32> to vector<16x32xf32>
    %49 = arith.mulf %44, %48 : vector<16x32xf32>
    %50 = vector.broadcast %1 : vector<1x32xf32> to vector<16x32xf32>
    %51 = arith.mulf %49, %50 : vector<16x32xf32>
    %52 = vector.broadcast %2 : vector<1x32xf32> to vector<16x32xf32>
    %53 = arith.addf %51, %52 : vector<16x32xf32>
    %c0_25 = arith.constant 0 : index
    %c0_26 = arith.constant 0 : index
    %54 = vector.load %arg6[%c0_25, %c0_26] : memref<32x128xf32, #tpu.memory_space<vmem>>, vector<32x128xf32>
    %cst_27 = arith.constant dense<0.000000e+00> : vector<16x128xf32>
    %55 = tpu.matmul %53, %54, %cst_27 {dimension_numbers = #tpu.dot_dimension_numbers<[1], [0], [0], [1], [0, 0, 1, 1], [], []>} : vector<16x32xf32>, vector<32x128xf32>, vector<16x128xf32> -> vector<16x128xf32>
    %c0_28 = arith.constant 0 : index
    %c0_29 = arith.constant 0 : index
    %56 = vector.load %arg7[%c0_28, %c0_29] : memref<1x128xf32, #tpu.memory_space<vmem>>, vector<1x128xf32>
    %57 = vector.broadcast %56 : vector<1x128xf32> to vector<16x128xf32>
    %58 = arith.addf %55, %57 : vector<16x128xf32>
    %cst_30 = arith.constant 0.000000e+00 : f32
    %59 = vector.broadcast %cst_30 : f32 to vector<16x128xf32>
    %60 = arith.maximumf %58, %59 : vector<16x128xf32>
    %c0_31 = arith.constant 0 : index
    %c0_32 = arith.constant 0 : index
    %61 = vector.load %arg8[%c0_31, %c0_32] : memref<128x32xf32, #tpu.memory_space<vmem>>, vector<128x32xf32>
    %cst_33 = arith.constant dense<0.000000e+00> : vector<16x32xf32>
    %62 = tpu.matmul %60, %61, %cst_33 {dimension_numbers = #tpu.dot_dimension_numbers<[1], [0], [0], [1], [0, 0, 1, 1], [], []>} : vector<16x128xf32>, vector<128x32xf32>, vector<16x32xf32> -> vector<16x32xf32>
    %c0_34 = arith.constant 0 : index
    %c0_35 = arith.constant 0 : index
    %63 = vector.load %arg9[%c0_34, %c0_35] : memref<1x32xf32, #tpu.memory_space<vmem>>, vector<1x32xf32>
    %64 = vector.broadcast %63 : vector<1x32xf32> to vector<16x32xf32>
    %65 = arith.addf %62, %64 : vector<16x32xf32>
    %66 = arith.addf %65, %53 : vector<16x32xf32>
    %cst_36 = arith.constant dense<0.000000e+00> : vector<16xf32>
    %67 = vector.multi_reduction <add>, %66, %cst_36 [1] : vector<16x32xf32> to vector<16xf32>
    %68 = vector.shape_cast %67 : vector<16xf32> to vector<16x1xf32>
    %cst_37 = arith.constant 3.200000e+01 : f32
    %69 = vector.broadcast %cst_37 : f32 to vector<16x1xf32>
    %70 = arith.divf %68, %69 : vector<16x1xf32>
    %71 = vector.broadcast %70 : vector<16x1xf32> to vector<16x32xf32>
    %72 = arith.subf %66, %71 : vector<16x32xf32>
    %73 = arith.mulf %72, %72 : vector<16x32xf32>
    %cst_38 = arith.constant dense<0.000000e+00> : vector<16xf32>
    %74 = vector.multi_reduction <add>, %73, %cst_38 [1] : vector<16x32xf32> to vector<16xf32>
    %75 = vector.shape_cast %74 : vector<16xf32> to vector<16x1xf32>
    %cst_39 = arith.constant 3.200000e+01 : f32
    %76 = vector.broadcast %cst_39 : f32 to vector<16x1xf32>
    %77 = arith.divf %75, %76 : vector<16x1xf32>
    %78 = vector.broadcast %70 : vector<16x1xf32> to vector<16x32xf32>
    %79 = arith.subf %66, %78 : vector<16x32xf32>
    %cst_40 = arith.constant 9.99999974E-6 : f32
    %80 = vector.broadcast %cst_40 : f32 to vector<16x1xf32>
    %81 = arith.addf %77, %80 : vector<16x1xf32>
    %82 = math.rsqrt %81 : vector<16x1xf32>
    %83 = vector.broadcast %82 : vector<16x1xf32> to vector<16x32xf32>
    %84 = arith.mulf %79, %83 : vector<16x32xf32>
    %85 = vector.broadcast %1 : vector<1x32xf32> to vector<16x32xf32>
    %86 = arith.mulf %84, %85 : vector<16x32xf32>
    %87 = vector.broadcast %2 : vector<1x32xf32> to vector<16x32xf32>
    %88 = arith.addf %86, %87 : vector<16x32xf32>
    %c0_41 = arith.constant 0 : index
    %c0_42 = arith.constant 0 : index
    %89 = vector.load %arg10[%c0_41, %c0_42] : memref<16x32xf32, #tpu.memory_space<vmem>>, vector<16x32xf32>
    tpu.vector_store %arg10[%c0_41, %c0_42], %88 {strides = array<i32>} : memref<16x32xf32, #tpu.memory_space<vmem>>, vector<16x32xf32>,
    return
  }
}

</mosaic_0001>

<bundles_post_ra>
// kernel: encoder_block.1
= control target key start
LH: loop header
LB: loop body
LE: loop exit
PB: predicated region body
PF: predicated region fallthrough
CT: control target
= control target key end

     0   :  { %vm56_vm0 = vcmask 261120   ;;  %s2706_s0 = inlined_call_operand.vmem [shape: f32[16,32], index: 0, kind: input, shape index: {}]   ;;  %s2707_s1 = inlined_call_operand.vmem [shape: f32[16,16], index: 1, kind: input, shape index: {}]   ;;  %s2708_s2 = inlined_call_operand.vmem [shape: f32[4,32,24], index: 2, kind: input, shape index: {}]   ;;  %s2709_s3 = inlined_call_operand.vmem [shape: f32[4,8,32], index: 3, kind: input, shape index: {}]   ;;  %s2710_s4 = inlined_call_operand.vmem [shape: f32[1,32], index: 4, kind: input, shape index: {}]   ;;  %s2711_s5 = inlined_call_operand.vmem [shape: f32[1,32], index: 5, kind: input, shape index: {}]   ;;  %s2712_s6 = inlined_call_operand.vmem [shape: f32[32,128], index: 6, kind: input, shape index: {}]   ;;  %s2713_s7 = inlined_call_operand.vmem [shape: f32[1,128], index: 7, kind: input, shape index: {}]   ;;  %s2714_s8 = inlined_call_operand.vmem [shape: f32[128,32], index: 8, kind: input, shape index: {}]   ;;  %s2715_s9 = inlined_call_operand.vmem [shape: f32[1,32], index: 9, kind: input, shape index: {}]   ;;  %s2716_s10 = inlined_call_operand.hbm [shape: f32[16,32], index: 10, kind: output, shape index: {}]  }
   0x1   :  { %v40_v0 = vld [vmem:[%s2708_s2] sm:$0xff]  ;;  %v41_v1 = vld [vmem:[%s2708_s2 + $0x8] sm:$0xff]  ;;  %v42_v2 = vld [vmem:[%s2708_s2 + $0x10] sm:$0xff] }
   0x2   :  { %v2108_v3 = vpack.c.bf16 %v41_v1, %v40_v0  ;;  %v43_v4 = vld [vmem:[%s2708_s2 + $0x18] sm:$0xff]  ;;  %v2404_v5 = vld [vmem:[%s2706_s0] sm:$0xff]  ;;  %v45_v8 = vld [vmem:[%s2708_s2 + $0x28] sm:$0xff] }
   0x3   :  { %v2112_v6 = vpack.c.bf16 %v43_v4, %v42_v2  ;;  %1950 = vmatprep.mubr.msk.f32.mxu0 %vm56_vm0, %v2404_v5  ;;  %v44_v7 = vld [vmem:[%s2708_s2 + $0x20] sm:$0xff]  ;;  %1983 = vmatprep.mubr.msk.f32.mxu1 %vm56_vm0, %v2404_v5  ;;  %v53_v11 = vld [vmem:[%s2708_s2 + $0x68] sm:$0xff]  ;;  %v54_v12 = vld [vmem:[%s2708_s2 + $0x70] sm:$0xff] }
   0x4   :  { %2109 = vmatprep.subr.bf16.mxu0 %v2108_v3  ;;  %v52_v9 = vld [vmem:[%s2708_s2 + $0x60] sm:$0xff]  ;;  %v2116_v10 = vpack.c.bf16 %v45_v8, %v44_v7  ;;  %v55_v13 = vld [vmem:[%s2708_s2 + $0x78] sm:$0xff]  ;;  %v46_v14 = vld [vmem:[%s2708_s2 + $0x30] sm:$0xff] }
   0x5   :  { %2111 = vmatpush3.bf16.msra.mxu0 %v2108_v3  ;;  %v47_v15 = vld [vmem:[%s2708_s2 + $0x38] sm:$0xff]  ;;  %v2132_v16 = vpack.c.bf16 %v53_v11, %v52_v9  ;;  %v2136_v17 = vpack.c.bf16 %v55_v13, %v54_v12 }
   0x6   :  { %2113 = vmatprep.subr.bf16.mxu0 %v2112_v6 }
   0x7   :  { %15 = vsyncpa [#allocation3], 0  ;;  %v2437_v18 = vld [vmem:[%s2706_s0 + $0x8] sm:$0xff]  ;;  %2133 = vmatprep.subr.bf16.mxu1 %v2132_v16  ;;  %v2120_v19 = vpack.c.bf16 %v47_v15, %v46_v14  ;;  %v48_v20 = vld [vmem:[%s2708_s2 + $0x40] sm:$0xff]  ;;  %vm369_vm1 = vcmask 64512   ;;  %vm738_vm3 = vcmask 130048  }
   0x8   :  { %2135 = vmatpush3.bf16.msra.mxu1 %v2132_v16  ;;  %v49_v21 = vld [vmem:[%s2708_s2 + $0x48] sm:$0xff]  ;;  %v50_v23 = vld [vmem:[%s2708_s2 + $0x50] sm:$0xff]  ;;  %v51_v24 = vld [vmem:[%s2708_s2 + $0x58] sm:$0xff]  ;;  %s2329_s2 = smov 120  }
   0x9   :  { %2115 = vmatpush3.bf16.msra.mxu0 %v2112_v6  ;;  %2137 = vmatprep.subr.bf16.mxu1 %v2136_v17  ;;  %v2124_v22 = vpack.c.bf16 %v49_v21, %v48_v20  ;;  %v2128_v25 = vpack.c.bf16 %v51_v24, %v50_v23  ;;  %vm2479_vm2 = vmpackc.low %vm369_vm1, %vm369_vm1  ;;  %v729_v56 = vld [vmem:[%s2707_s1 + $0x8] sm:$0xff]  ;;  %v728_v59 = vld [vmem:[%s2707_s1] sm:$0xff]  ;;  %s2330_s1 = smov 112  }
   0xa   :  { %2117 = vmatprep.subr.bf16.mxu0 %v2116_v10 }
   0xc   :  { %1951 = vmatmul.mubr.msk.f32.vlgmr.msra.gmra.mrb[0].mxu0 %vm56_vm0, %v2437_v18  ;;  %2139 = vmatpush3.bf16.msra.mxu1 %v2136_v17 }
   0xd   :  { %2119 = vmatpush3.bf16.msra.mxu0 %v2116_v10  ;;  %1961 = vmatprep.mubr.msk.f32.mxu0 %vm56_vm0, %v2404_v5 }
   0xe   :  { %2121 = vmatprep.subr.bf16.mxu0 %v2120_v19 }
   0xf   :  { %1984 = vmatmul.mubr.msk.f32.vlgmr.msra.gmra.mrb[0].mxu1 %vm56_vm0, %v2437_v18 }
  0x11   :  { %2123 = vmatpush3.bf16.msra.mxu0 %v2120_v19 }
  0x12   :  { %2125 = vmatprep.subr.bf16.mxu0 %v2124_v22 }
  0x14   :  { %1962 = vmatmul.mubr.msk.f32.vlgmr.msra.gmra.mrb[2].mxu0 %vm56_vm0, %v2437_v18 }
  0x15   :  { %2127 = vmatpush3.bf16.msra.mxu0 %v2124_v22  ;;  %1972 = vmatprep.mubr.msk.f32.mxu0 %vm56_vm0, %v2404_v5 }
  0x16   :  { %2129 = vmatprep.subr.bf16.mxu0 %v2128_v25 }
  0x19   :  { %2131 = vmatpush3.bf16.msra.mxu0 %v2128_v25 }
  0x1c   :  { %1973 = vmatmul.mubr.msk.f32.vlgmr.msra.gmra.mrb[4].mxu0 %vm56_vm0, %v2437_v18 }
  0xdf   :  { %v1952_v26 = vpop.f32.mrb[0].mxu0 }
  0xe0   :  { %v129_v27 = vpop.f32.mrb[1].mxu0 }
  0xe1   :  { %v2463_v28 = vpack.i.bf16 %v1952_v26, %v129_v27  ;;  %1990 = vmatprep.mubr.msk.f32.mxu0 %vm369_vm1, %v129_v27 }
  0xe2   :  { %v1985_v29 = vpop.f32.mrb[0].mxu1 }
  0xe3   :  { %2226 = vrot.lane.b32.xlu0 %v2463_v28, %s2329_s2  ;;  %v354_v30 = vpop.f32.mrb[1].mxu1 }
  0xe4   :  { %v2467_v31 = vpack.i.bf16 %v1985_v29, %v354_v30 }
  0xe7   :  { %v1963_v32 = vpop.f32.mrb[2].mxu0 }
  0xe8   :  { %v204_v33 = vpop.f32.mrb[3].mxu0 }
  0xe9   :  { %v2469_v34 = vpack.i.bf16 %v1963_v32, %v204_v33  ;;  %1997 = vmatprep.mubr.msk.f32.mxu1 %vm369_vm1, %v204_v33 }
  0xeb   :  { %2231 = vrot.lane.b32.xlu0 %v2469_v34, %s2329_s2 }
  0xef   :  { %v1974_v35 = vpop.f32.mrb[4].mxu0 }
  0xf0   :  { %v279_v36 = vpop.f32.mrb[5].mxu0 }
  0xf1   :  { %v2473_v37 = vpack.i.bf16 %v1974_v35, %v279_v36 }
  0xf3   :  { %2236 = vrot.lane.b32.xlu1 %v2473_v37, %s2329_s2 }
  0xf7   :  { %2241 = vrot.lane.b32.xlu1 %v2467_v31, %s2329_s2 }
 0x155   :  { %v2227_v38 = vpop.permute.xlu0 %2226 }
 0x156   :  { %v2229_v39 = vunpack.i.h.bf16 %v2227_v38  ;;  %v2228_v40 = vunpack.i.l.bf16 %v2227_v38 }
 0x158   :  { %v2140_v42 = vpack.c.bf16 %v2229_v39, %v2228_v40 }
 0x15a   :  { %2142 = vmatprep.subr.msk.bf16.mxu0 %vm2479_vm2, %v2140_v42 }
 0x15b   :  { %2145 = vmatpush3.bf16.xpose.msk.msra.mxu0 %vm2479_vm2, %v2140_v42 }
 0x15d   :  { %v2232_v43 = vpop.permute.xlu0 %2231 }
 0x15e   :  { %v2234_v44 = vunpack.i.h.bf16 %v2232_v43  ;;  %v2233_v45 = vunpack.i.l.bf16 %v2232_v43 }
 0x160   :  { %v2146_v46 = vpack.c.bf16 %v2234_v44, %v2233_v45 }
 0x162   :  { %1991 = vmatmul.mubr.msk.f32.vlgmr.msra.gmra.mrb[6].mxu0 %vm369_vm1, %v1952_v26  ;;  %2148 = vmatprep.subr.msk.bf16.mxu1 %vm2479_vm2, %v2146_v46 }
 0x163   :  { %2151 = vmatpush3.bf16.xpose.msk.msra.mxu1 %vm2479_vm2, %v2146_v46  ;;  %2004 = vmatprep.mubr.msk.f32.mxu0 %vm369_vm1, %v279_v36 }
 0x165   :  { %v2237_v47 = vpop.permute.xlu1 %2236 }
 0x166   :  { %v2239_v48 = vunpack.i.h.bf16 %v2237_v47  ;;  %v2238_v49 = vunpack.i.l.bf16 %v2237_v47 }
 0x168   :  { %v2152_v50 = vpack.c.bf16 %v2239_v48, %v2238_v49 }
 0x169   :  { %v2242_v51 = vpop.permute.xlu1 %2241 }
 0x16a   :  { %v2244_v52 = vunpack.i.h.bf16 %v2242_v51  ;;  %v2243_v53 = vunpack.i.l.bf16 %v2242_v51  ;;  %1998 = vmatmul.mubr.msk.f32.vlgmr.msra.gmra.mrb[2].mxu1 %vm369_vm1, %v1963_v32  ;;  %2154 = vmatprep.subr.msk.bf16.mxu0 %vm2479_vm2, %v2152_v50 }
 0x16b   :  { %2157 = vmatpush3.bf16.xpose.msk.msra.mxu0 %vm2479_vm2, %v2152_v50  ;;  %2011 = vmatprep.mubr.msk.f32.mxu1 %vm369_vm1, %v354_v30 }
 0x16c   :  { %v2158_v54 = vpack.c.bf16 %v2244_v52, %v2243_v53 }
 0x16e   :  { %2160 = vmatprep.subr.msk.bf16.mxu1 %vm2479_vm2, %v2158_v54 }
 0x16f   :  { %2163 = vmatpush3.bf16.xpose.msk.msra.mxu1 %vm2479_vm2, %v2158_v54 }
 0x172   :  { %2005 = vmatmul.mubr.msk.f32.vlgmr.msra.gmra.mrb[8].mxu0 %vm369_vm1, %v1974_v35 }
 0x176   :  { %2012 = vmatmul.mubr.msk.f32.vlgmr.msra.gmra.mrb[4].mxu1 %vm369_vm1, %v1985_v29 }
 0x235   :  { %v1992_v55 = vpop.f32.mrb[6].mxu0 }
 0x236   :  { %v721_v57 = vmul.f32 0.35355338, %v1992_v55  ;;  %v444_v58 = vpop.f32.mrb[7].mxu0 }
 0x237   :  { %v720_v60 = vmul.f32 0.35355338, %v444_v58 }
 0x238   :  { %v731_v61 = vadd.f32 %v729_v56, %v721_v57 }
 0x239   :  { %v730_v62 = vadd.f32 %v728_v59, %v720_v60 }
 0x23a   :  { %v742_v63 = vsel %vm738_vm3, %v731_v61, -inf }
 0x23b   :  { %743 = vmax.xlane.f32.xlu1 %v742_v63  ;;  %v739_v0 = vsel %vm738_vm3, %v730_v62, -inf }
 0x23c   :  { %740 = vmax.xlane.f32.xlu0 %v739_v0 }
 0x23d   :  { %v1999_v1 = vpop.f32.mrb[2].mxu1 }
 0x23e   :  { %v723_v2 = vmul.f32 0.35355338, %v1999_v1  ;;  %v533_v3 = vpop.f32.mrb[3].mxu1 }
 0x23f   :  { %v722_v4 = vmul.f32 0.35355338, %v533_v3 }
 0x240   :  { %v733_v6 = vadd.f32 %v729_v56, %v723_v2 }
 0x241   :  { %v732_v8 = vadd.f32 %v728_v59, %v722_v4 }
 0x242   :  { %v748_v7 = vsel %vm738_vm3, %v733_v6, -inf }
 0x243   :  { %749 = vmax.xlane.f32.xlu0 %v748_v7  ;;  %v745_v12 = vsel %vm738_vm3, %v732_v8, -inf }
 0x245   :  { %v2006_v9 = vpop.f32.mrb[8].mxu0 }
 0x246   :  { %v725_v10 = vmul.f32 0.35355338, %v2006_v9  ;;  %v622_v11 = vpop.f32.mrb[9].mxu0 }
 0x247   :  { %v724_v13 = vmul.f32 0.35355338, %v622_v11  ;;  %746 = vmax.xlane.f32.xlu0 %v745_v12 }
 0x248   :  { %v735_v14 = vadd.f32 %v729_v56, %v725_v10 }
 0x249   :  { %v2013_v15 = vpop.f32.mrb[4].mxu1  ;;  %v2515_v16 = vadd.f32 %v728_v59, %v724_v13 }
 0x24a   :  { %v727_v17 = vmul.f32 0.35355338, %v2013_v15  ;;  %v711_v19 = vpop.f32.mrb[5].mxu1  ;;  %v754_v20 = vsel %vm738_vm3, %v735_v14, -inf }
 0x24b   :  { %v726_v21 = vmul.f32 0.35355338, %v711_v19  ;;  %755 = vmax.xlane.f32.xlu0 %v754_v20  ;;  %v751_v22 = vsel %vm738_vm3, %v2515_v16, -inf }
 0x24c   :  { %752 = vmax.xlane.f32.xlu1 %v751_v22  ;;  %v737_v23 = vadd.f32 %v729_v56, %v727_v17 }
 0x24d   :  { %v2520_v24 = vadd.f32 %v728_v59, %v726_v21 }
 0x24e   :  { %v760_v25 = vsel %vm738_vm3, %v737_v23, -inf }
 0x24f   :  { %761 = vmax.xlane.f32.xlu0 %v760_v25  ;;  %v757_v26 = vsel %vm738_vm3, %v2520_v24, -inf }
 0x250   :  { %758 = vmax.xlane.f32.xlu1 %v757_v26 }
 0x261   :  { %2246 = vrot.lane.b32.xlu1 %v2463_v28, %s2330_s1 }
 0x2c8   :  { %v744_v27 = vpop.xlane.xlu1 %743 }
 0x2c9   :  { %v764_v29 = vsub.f32 %v731_v61, %v744_v27  ;;  %v741_v30 = vpop.xlane.xlu0 %740 }
 0x2ca   :  { %v763_v32 = vsub.f32 %v730_v62, %v741_v30 }
 0x2cb   :  { %v773_v33 = vmul.f32 1.442695, %v764_v29 }
 0x2cc   :  { %v771_v35 = vmul.f32 1.442695, %v763_v32 }
 0x2cd   :  { %2265 = vpow2.f32 %v773_v33 }
 0x2ce   :  { %2267 = vpow2.f32 %v771_v35 }
 0x2d0   :  { %v750_v36 = vpop.xlane.xlu0 %749 }
 0x2d1   :  { %v766_v38 = vsub.f32 %v733_v6, %v750_v36 }
 0x2d3   :  { %v777_v39 = vmul.f32 1.442695, %v766_v38 }
 0x2d4   :  { %v747_v40 = vpop.xlane.xlu0 %746 }
 0x2d5   :  { %2269 = vpow2.f32 %v777_v39  ;;  %v765_v41 = vsub.f32 %v732_v8, %v747_v40 }
 0x2d7   :  { %v2266_v42 = vpop.eup %2265  ;;  %v775_v43 = vmul.f32 1.442695, %v765_v41 }
 0x2d8   :  { %v2268_v44 = vpop.eup %2267  ;;  %v756_v45 = vpop.xlane.xlu0 %755  ;;  %v790_v28 = vsel %vm738_vm3, %v2266_v42, 0.0 }
 0x2d9   :  { %2271 = vpow2.f32 %v775_v43  ;;  %v768_v46 = vsub.f32 %v735_v14, %v756_v45  ;;  %791 = vadd.xlane.f32.xlu0 %v790_v28  ;;  %v753_v47 = vpop.xlane.xlu1 %752  ;;  %v787_v48 = vsel %vm738_vm3, %v2268_v44, 0.0 }
 0x2da   :  { %788 = vadd.xlane.f32.xlu1 %v787_v48  ;;  %v767_v2 = vsub.f32 %v2515_v16, %v753_v47  ;;  %v1175_v48 = vld [vmem:[%s2709_s3] sm:$0xff] }
 0x2db   :  { %v781_v49 = vmul.f32 1.442695, %v768_v46 }
 0x2dc   :  { %v762_v50 = vpop.xlane.xlu0 %761  ;;  %v779_v3 = vmul.f32 1.442695, %v767_v2 }
 0x2dd   :  { %2273 = vpow2.f32 %v781_v49  ;;  %v770_v51 = vsub.f32 %v737_v23, %v762_v50  ;;  %v759_v52 = vpop.xlane.xlu1 %758  ;;  %v1176_v49 = vld [vmem:[%s2709_s3 + $0x8] sm:$0xff]  ;;  %v1177_v50 = vld [vmem:[%s2709_s3 + $0x10] sm:$0xff] }
 0x2de   :  { %v769_v4 = vsub.f32 %v2520_v24, %v759_v52 }
 0x2df   :  { %v2529_v53 = vpop.eup %2269  ;;  %v785_v54 = vmul.f32 1.442695, %v770_v51  ;;  %v1178_v51 = vld [vmem:[%s2709_s3 + $0x18] sm:$0xff] }
 0x2e0   :  { %v796_v55 = vsel %vm738_vm3, %v2529_v53, 0.0  ;;  %v783_v6 = vmul.f32 1.442695, %v769_v4 }
 0x2e1   :  { %2275 = vpow2.f32 %v785_v54  ;;  %797 = vadd.xlane.f32.xlu0 %v796_v55  ;;  %v2247_v56 = vpop.permute.xlu1 %2246 }
 0x2e2   :  { %v2249_v57 = vunpack.i.h.bf16 %v2247_v56  ;;  %v2248_v58 = vunpack.i.l.bf16 %v2247_v56  ;;  %2277 = vpow2.f32 %v779_v3 }
 0x2e3   :  { %v2272_v59 = vpop.eup %2271  ;;  %2279 = vpow2.f32 %v783_v6 }
 0x2e4   :  { %v2164_v60 = vpack.c.bf16 %v2249_v57, %v2248_v58  ;;  %v793_v61 = vsel %vm738_vm3, %v2272_v59, 0.0 }
 0x2e5   :  { %794 = vadd.xlane.f32.xlu1 %v793_v61 }
 0x2e6   :  { %2165 = vmatprep.subr.bf16.mxu0 %v2164_v60 }
 0x2e7   :  { %v2534_v62 = vpop.eup %2273  ;;  %2167 = vmatpush3.bf16.msra.mxu0 %v2164_v60 }
 0x2e8   :  { %v802_v63 = vsel %vm738_vm3, %v2534_v62, 0.0 }
 0x2e9   :  { %803 = vadd.xlane.f32.xlu0 %v802_v63 }
 0x2eb   :  { %v2538_v0 = vpop.eup %2275 }
 0x2ec   :  { %v808_v1 = vsel %vm738_vm3, %v2538_v0, 0.0  ;;  %v2278_v7 = vpop.eup %2277 }
 0x2ed   :  { %809 = vadd.xlane.f32.xlu0 %v808_v1  ;;  %v799_v8 = vsel %vm738_vm3, %v2278_v7, 0.0  ;;  %v2280_v9 = vpop.eup %2279 }
 0x2ee   :  { %v805_v10 = vsel %vm738_vm3, %v2280_v9, 0.0 }
 0x2f6   :  { %2256 = vrot.lane.b32.xlu1 %v2473_v37, %s2330_s1 }
 0x303   :  { %2251 = vrot.lane.b32.xlu0 %v2469_v34, %s2330_s1 }
 0x31a   :  { %800 = vadd.xlane.f32.xlu1 %v799_v8 }
 0x31e   :  { %806 = vadd.xlane.f32.xlu1 %v805_v10 }
 0x32f   :  { %2261 = vrot.lane.b32.xlu1 %v2467_v31, %s2330_s1 }
 0x366   :  { %v792_v34 = vpop.xlane.xlu0 %791 }
 0x367   :  { %2281 = vrcp.f32 %v792_v34  ;;  %v789_v37 = vpop.xlane.xlu1 %788 }
 0x368   :  { %2283 = vrcp.f32 %v789_v37 }
 0x36e   :  { %v798_v13 = vpop.xlane.xlu0 %797 }
 0x371   :  { %v2282_v11 = vpop.eup %2281 }
 0x372   :  { %v2284_v12 = vpop.eup %2283  ;;  %v795_v14 = vpop.xlane.xlu1 %794  ;;  %v814_v16 = vmul.f32 %v2282_v11, %v2266_v42 }
 0x373   :  { %2285 = vrcp.f32 %v795_v14  ;;  %v812_v15 = vmul.f32 %v2284_v12, %v2268_v44 }
 0x374   :  { %2287 = vrcp.f32 %v798_v13 }
 0x375   :  { %2018 = vmatprep.mubr.msk.f32.mxu0 %vm738_vm3, %v812_v15 }
 0x376   :  { %v804_v17 = vpop.xlane.xlu0 %803  ;;  %2019 = vmatmul.mubr.msk.f32.vlgmr.msra.gmra.mrb[10].mxu0 %vm738_vm3, %v814_v16  ;;  %v2257_v20 = vpop.permute.xlu1 %2256 }
 0x377   :  { %v2259_v23 = vunpack.i.h.bf16 %v2257_v20  ;;  %v2258_v24 = vunpack.i.l.bf16 %v2257_v20  ;;  %2289 = vrcp.f32 %v804_v17 }
 0x379   :  { %v2172_v30 = vpack.c.bf16 %v2259_v23, %v2258_v24 }
 0x37a   :  { %v810_v19 = vpop.xlane.xlu0 %809 }
 0x37d   :  { %v2286_v31 = vpop.eup %2285 }
 0x37e   :  { %v2252_v21 = vpop.permute.xlu0 %2251  ;;  %v816_v22 = vmul.f32 %v2286_v31, %v2272_v59  ;;  %v2288_v29 = vpop.eup %2287 }
 0x37f   :  { %v2254_v25 = vunpack.i.h.bf16 %v2252_v21  ;;  %v2253_v26 = vunpack.i.l.bf16 %v2252_v21  ;;  %v818_v32 = vmul.f32 %v2288_v29, %v2529_v53 }
 0x380   :  { %2025 = vmatprep.mubr.msk.f32.mxu0 %vm738_vm3, %v816_v22 }
 0x381   :  { %v2168_v27 = vpack.c.bf16 %v2254_v25, %v2253_v26  ;;  %v2290_v40 = vpop.eup %2289 }
 0x382   :  { %v822_v44 = vmul.f32 %v2290_v40, %v2534_v62  ;;  %v1657_v40 = vld [vmem:[%s2714_s8 + $0x8] sm:$0xff] }
 0x383   :  { %2169 = vmatprep.subr.bf16.mxu0 %v2168_v27 }
 0x384   :  { %2171 = vmatpush3.bf16.msra.mxu0 %v2168_v27 }
 0x385   :  { %2173 = vmatprep.subr.bf16.mxu0 %v2172_v30 }
 0x387   :  { %2026 = vmatmul.mubr.msk.f32.vlgmr.msra.gmra.mrb[12].mxu0 %vm738_vm3, %v818_v32  ;;  %v1563_v32 = vld [vmem:[%s2712_s6 + $0x8] sm:$0xff] }
 0x388   :  { %2175 = vmatpush3.bf16.msra.mxu0 %v2172_v30  ;;  %v1562_v30 = vld [vmem:[%s2712_s6] sm:$0xff] }
 0x389   :  { %2042 = vmatprep.subr.mxu0 %v1175_v48 }
 0x3a7   :  { %v801_v33 = vpop.xlane.xlu1 %800 }
 0x3a8   :  { %2291 = vrcp.f32 %v801_v33  ;;  %v2180_v33 = vpack.c.bf16 %v1563_v32, %v1562_v30 }
 0x3a9   :  { %2293 = vrcp.f32 %v810_v19 }
 0x3ab   :  { %v807_v35 = vpop.xlane.xlu1 %806 }
 0x3ac   :  { %2295 = vrcp.f32 %v807_v35  ;;  %v1564_v35 = vld [vmem:[%s2712_s6 + $0x10] sm:$0xff] }
 0x3af   :  { %v2262_v36 = vpop.permute.xlu1 %2261 }
 0x3b0   :  { %v2264_v38 = vunpack.i.h.bf16 %v2262_v36  ;;  %v2263_v39 = vunpack.i.l.bf16 %v2262_v36  ;;  %v1565_v36 = vld [vmem:[%s2712_s6 + $0x18] sm:$0xff] }
 0x3b2   :  { %v2292_v41 = vpop.eup %2291  ;;  %v2176_v42 = vpack.c.bf16 %v2264_v38, %v2263_v39  ;;  %v2184_v38 = vpack.c.bf16 %v1565_v36, %v1564_v35  ;;  %v1656_v39 = vld [vmem:[%s2714_s8] sm:$0xff] }
 0x3b3   :  { %v820_v43 = vmul.f32 %v2292_v41, %v2278_v7  ;;  %v2294_v45 = vpop.eup %2293  ;;  %v1658_v41 = vld [vmem:[%s2714_s8 + $0x10] sm:$0xff] }
 0x3b4   :  { %2177 = vmatprep.subr.bf16.mxu1 %v2176_v42  ;;  %v826_v47 = vmul.f32 %v2294_v45, %v2538_v0  ;;  %v1660_v45 = vld [vmem:[%s2714_s8 + $0x20] sm:$0xff] }
 0x3b5   :  { %2032 = vmatprep.mubr.msk.f32.mxu0 %vm738_vm3, %v820_v43  ;;  %2179 = vmatpush3.bf16.msra.mxu1 %v2176_v42  ;;  %v2188_v42 = vpack.c.bf16 %v1657_v40, %v1656_v39  ;;  %v1659_v43 = vld [vmem:[%s2714_s8 + $0x18] sm:$0xff] }
 0x3b6   :  { %v2296_v28 = vpop.eup %2295  ;;  %2033 = vmatmul.mubr.msk.f32.vlgmr.msra.gmra.mrb[14].mxu0 %vm738_vm3, %v822_v44  ;;  %2047 = vmatprep.subr.mxu1 %v1176_v49  ;;  %v2192_v44 = vpack.c.bf16 %v1659_v43, %v1658_v41 }
 0x3b7   :  { %v824_v46 = vmul.f32 %v2296_v28, %v2280_v9  ;;  %2043 = vmatpush3.msra.mxu0 %v1175_v48  ;;  %v1661_v28 = vld [vmem:[%s2714_s8 + $0x28] sm:$0xff]  ;;  %v1663_v48 = vld [vmem:[%s2714_s8 + $0x38] sm:$0xff] }
 0x3b8   :  { %2052 = vmatprep.subr.mxu0 %v1177_v50 }
 0x3b9   :  { %2039 = vmatprep.mubr.msk.f32.mxu1 %vm738_vm3, %v824_v46  ;;  %v2196_v46 = vpack.c.bf16 %v1661_v28, %v1660_v45 }
 0x3ba   :  { %2040 = vmatmul.mubr.msk.f32.vlgmr.msra.gmra.mrb[6].mxu1 %vm738_vm3, %v826_v47  ;;  %v1662_v47 = vld [vmem:[%s2714_s8 + $0x30] sm:$0xff] }
 0x3bb   :  { %2048 = vmatpush3.msra.mxu1 %v1176_v49  ;;  %v2200_v49 = vpack.c.bf16 %v1663_v48, %v1662_v47 }
 0x3bc   :  { %2057 = vmatprep.subr.mxu1 %v1178_v51 }
 0x449   :  { %v2020_v52 = vpop.f32.mrb[10].mxu0 }
 0x44a   :  { %v905_v53 = vpop.f32.mrb[11].mxu0 }
 0x44b   :  { %2044 = vmatprep.mubr.msk.f32.mxu0 %vm369_vm1, %v905_v53  ;;  %v1666_v53 = vld [vmem:[%s2714_s8 + $0x50] sm:$0xff] }
 0x44c   :  { %2045 = vmatmul.mubr.msk.f32.vlgmr.msra.gmra.mrb[16].mxu0 %vm369_vm1, %v2020_v52 }
 0x44d   :  { %2053 = vmatpush3.msra.mxu0 %v1177_v50  ;;  %v1664_v50 = vld [vmem:[%s2714_s8 + $0x40] sm:$0xff] }
 0x44e   :  { %2181 = vmatprep.subr.bf16.mxu0 %v2180_v33 }
 0x45a   :  { %v2027_v54 = vpop.f32.mrb[12].mxu0 }
 0x45b   :  { %v992_v55 = vpop.f32.mrb[13].mxu0 }
 0x45c   :  { %2049 = vmatprep.mubr.msk.f32.mxu1 %vm369_vm1, %v992_v55 }
 0x45d   :  { %2050 = vmatmul.mubr.msk.f32.vlgmr.msra.gmra.mrb[8].mxu1 %vm369_vm1, %v2027_v54  ;;  %v1667_v54 = vld [vmem:[%s2714_s8 + $0x58] sm:$0xff] }
 0x45e   :  { %2058 = vmatpush3.msra.mxu1 %v1178_v51  ;;  %v1665_v51 = vld [vmem:[%s2714_s8 + $0x48] sm:$0xff]  ;;  %v2208_v55 = vpack.c.bf16 %v1667_v54, %v1666_v53 }
 0x45f   :  { %2189 = vmatprep.subr.bf16.mxu1 %v2188_v42  ;;  %v2204_v52 = vpack.c.bf16 %v1665_v51, %v1664_v50 }
 0x489   :  { %v2034_v56 = vpop.f32.mrb[14].mxu0 }
 0x48a   :  { %v1079_v57 = vpop.f32.mrb[15].mxu0 }
 0x48b   :  { %2054 = vmatprep.mubr.msk.f32.mxu0 %vm369_vm1, %v1079_v57  ;;  %v1669_v57 = vld [vmem:[%s2714_s8 + $0x68] sm:$0xff] }
 0x48c   :  { %2055 = vmatmul.mubr.msk.f32.vlgmr.msra.gmra.mrb[18].mxu0 %vm369_vm1, %v2034_v56  ;;  %v1668_v56 = vld [vmem:[%s2714_s8 + $0x60] sm:$0xff] }
 0x48d   :  { %v2041_v58 = vpop.f32.mrb[6].mxu1  ;;  %2183 = vmatpush3.bf16.msra.mxu0 %v2180_v33 }
 0x48e   :  { %v1166_v59 = vpop.f32.mrb[7].mxu1  ;;  %2185 = vmatprep.subr.bf16.mxu0 %v2184_v38 }
 0x48f   :  { %2059 = vmatprep.mubr.msk.f32.mxu1 %vm369_vm1, %v1166_v59 }
 0x490   :  { %2060 = vmatmul.mubr.msk.f32.vlgmr.msra.gmra.mrb[10].mxu1 %vm369_vm1, %v2041_v58  ;;  %v2212_v58 = vpack.c.bf16 %v1669_v57, %v1668_v56 }
 0x491   :  { %2187 = vmatpush3.bf16.msra.mxu0 %v2184_v38  ;;  %2191 = vmatpush3.bf16.msra.mxu1 %v2188_v42 }
 0x492   :  { %2193 = vmatprep.subr.bf16.mxu1 %v2192_v44 }
 0x495   :  { %2195 = vmatpush3.bf16.msra.mxu1 %v2192_v44 }
 0x496   :  { %2197 = vmatprep.subr.bf16.mxu1 %v2196_v46 }
 0x499   :  { %2199 = vmatpush3.bf16.msra.mxu1 %v2196_v46 }
 0x49a   :  { %2201 = vmatprep.subr.bf16.mxu1 %v2200_v49 }
 0x49d   :  { %2203 = vmatpush3.bf16.msra.mxu1 %v2200_v49 }
 0x49e   :  { %2205 = vmatprep.subr.bf16.mxu1 %v2204_v52 }
 0x4a1   :  { %2207 = vmatpush3.bf16.msra.mxu1 %v2204_v52 }
 0x4a2   :  { %2209 = vmatprep.subr.bf16.mxu1 %v2208_v55 }
 0x4a5   :  { %2211 = vmatpush3.bf16.msra.mxu1 %v2208_v55 }
 0x4a6   :  { %2213 = vmatprep.subr.bf16.mxu1 %v2212_v58 }
 0x4a9   :  { %2215 = vmatpush3.bf16.msra.mxu1 %v2212_v58 }
 0x51f   :  { %v2046_v60 = vpop.f32.mrb[16].mxu0 }
 0x520   :  { %v1251_v61 = vpop.f32.mrb[17].mxu0  ;;  %v1510_v63 = vsel %vm56_vm0, %v2046_v60, 0.0 }
 0x521   :  { %v1503_v2 = vsel %vm56_vm0, %v1251_v61, 0.0 }
 0x530   :  { %v2051_v62 = vpop.f32.mrb[8].mxu1 }
 0x531   :  { %v1511_v0 = vsel %vm56_vm0, %v2051_v62, 0.0  ;;  %v1332_v1 = vpop.f32.mrb[9].mxu1 }
 0x532   :  { %v1512_v3 = vadd.f32 %v1511_v0, %v1510_v63  ;;  %v1504_v4 = vsel %vm56_vm0, %v1332_v1, 0.0 }
 0x533   :  { %v1505_v6 = vadd.f32 %v1504_v4, %v1503_v2  ;;  %v2658_v2 = vld [vmem:[%s2710_s4] ss:$0 sm:$0xff] }
 0x534   :  { %v2663_v4 = vld [vmem:[%s2711_s5] ss:$0 sm:$0xff] }
 0x55f   :  { %v2056_v7 = vpop.f32.mrb[18].mxu0 }
 0x560   :  { %v1513_v8 = vsel %vm56_vm0, %v2056_v7, 0.0  ;;  %v1413_v9 = vpop.f32.mrb[19].mxu0 }
 0x561   :  { %v1514_v10 = vadd.f32 %v1513_v8, %v1512_v3  ;;  %v1506_v34 = vsel %vm56_vm0, %v1413_v9, 0.0 }
 0x562   :  { %v1507_v37 = vadd.f32 %v1506_v34, %v1505_v6 }
 0x563   :  { %v2061_v11 = vpop.f32.mrb[10].mxu1 }
 0x564   :  { %v1515_v12 = vsel %vm56_vm0, %v2061_v11, 0.0  ;;  %v1494_v13 = vpop.f32.mrb[11].mxu1  ;;  %v1671_v11 = vld [vmem:[%s2714_s8 + $0x78] sm:$0xff] }
 0x565   :  { %v1516_v14 = vadd.f32 %v1515_v12, %v1514_v10  ;;  %v1508_v15 = vsel %vm56_vm0, %v1494_v13, 0.0  ;;  %v1846_v13 = vld [vmem:[%s2713_s7] ss:$0 sm:$0xff]  ;;  %s2331_s7 = smov [#allocation2]  }
 0x566   :  { %v1509_v16 = vadd.f32 %v1508_v15, %v1507_v37  ;;  %v1670_v37 = vld [vmem:[%s2714_s8 + $0x70] sm:$0xff]  ;;  %s1793_s8 = sshll.u32 %s2331_s7, 4  ;;  %s1794_s8 = int_to_ptr.vmem [resolvable:$true] %s1793_s8 }
 0x567   :  { %v1518_v17 = vadd.f32 %v1516_v14, %v2437_v18  ;;  %v2216_v12 = vpack.c.bf16 %v1671_v11, %v1670_v37  ;;  %p2310_p1 = scmp.lt.s32.totalorder %s1794_s8, %s1794_s8 }
 0x568   :  { %v1517_v19 = vadd.f32 %v1509_v16, %v2404_v5 }
 0x569   :  { %v1522_v20 = vsel %vm56_vm0, %v1518_v17, 0.0  ;;  %2217 = vmatprep.subr.bf16.mxu1 %v2216_v12 }
 0x56a   :  { %1523 = vadd.xlane.f32.xlu1 %v1522_v20  ;;  %v1519_v31 = vsel %vm56_vm0, %v1517_v19, 0.0  ;;  %2219 = vmatpush3.bf16.msra.mxu1 %v2216_v12 }
 0x56b   :  { %1520 = vadd.xlane.f32.xlu0 %v1519_v31  ;;  %v1849_v31 = vld [vmem:[%s2715_s9] ss:$0 sm:$0xff]  ;;  %s2305_s9 = scalar_lea.vmem %s1794_s8, 256 }
 0x56c   :  { %p2306_p0 = scmp.ne.s32.totalorder %s1794_s8, %s2305_s9  ;;  %p2311_p2 = scmp.lt.s32.totalorder %s2305_s9, %s2305_s9 }
 0x56e   :  { %p2312_p3 = por %p2311_p2, %p2310_p1 }
 0x570   :  { %p2313_p4 = pnand %p2312_p3, %p2306_p0 }
 0x5f7   :  { %v1524_v21 = vpop.xlane.xlu1 %1523 }
 0x5f8   :  { %v1527_v22 = vmul.f32 0.03125, %v1524_v21  ;;  %v1521_v23 = vpop.xlane.xlu0 %1520 }
 0x5f9   :  { %v1526_v24 = vmul.f32 0.03125, %v1521_v23 }
 0x5fa   :  { %v2595_v25 = vsub.f32 %v1518_v17, %v1527_v22 }
 0x5fb   :  { %v1528_v26 = vsub.f32 %v1517_v19, %v1526_v24 }
 0x5fc   :  { %v1531_v18 = vmul.f32 %v2595_v25, %v2595_v25 }
 0x5fd   :  { %v1530_v27 = vmul.f32 %v1528_v26, %v1528_v26 }
 0x5fe   :  { %v1535_v5 = vsel %vm56_vm0, %v1531_v18, 0.0 }
 0x5ff   :  { %v1532_v29 = vsel %vm56_vm0, %v1530_v27, 0.0 }
 0x600   :  { %1533 = vadd.xlane.f32.xlu0 %v1532_v29 }
 0x604   :  { %1536 = vadd.xlane.f32.xlu0 %v1535_v5 }
 0x68d   :  { %v1534_v59 = vpop.xlane.xlu0 %1533 }
 0x68e   :  { %v1538_v60 = vmul.f32 0.03125, %v1534_v59 }
 0x690   :  { %v1540_v61 = vadd.f32 1e-05, %v1538_v60 }
 0x691   :  { %v1537_v62 = vpop.xlane.xlu0 %1536 }
 0x692   :  { %2297 = vrsqrt.f32 %v1540_v61  ;;  %v1539_v63 = vmul.f32 0.03125, %v1537_v62 }
 0x694   :  { %v1541_v0 = vadd.f32 1e-05, %v1539_v63 }
 0x696   :  { %2299 = vrsqrt.f32 %v1541_v0 }
 0x69c   :  { %v2298_v1 = vpop.eup %2297 }
 0x69d   :  { %v1544_v3 = vmul.f32 %v2298_v1, %v1528_v26 }
 0x69f   :  { %v1552_v6 = vmul.f32 %v2658_v2, %v1544_v3 }
 0x6a0   :  { %v2300_v7 = vpop.eup %2299 }
 0x6a1   :  { %v1545_v8 = vmul.f32 %v2300_v7, %v2595_v25  ;;  %v1560_v9 = vadd.f32 %v2663_v4, %v1552_v6 }
 0x6a3   :  { %2070 = vmatprep.mubr.msk.f32.mxu0 %vm56_vm0, %v1560_v9  ;;  %v1553_v10 = vmul.f32 %v2658_v2, %v1545_v8 }
 0x6a5   :  { %v1561_v34 = vadd.f32 %v2663_v4, %v1553_v10 }
 0x6a7   :  { %2071 = vmatmul.mubr.msk.f32.vlgmr.msra.gmra.mrb[20].mxu0 %vm56_vm0, %v1561_v34 }
 0x77a   :  { %v2072_v14 = vpop.f32.mrb[20].mxu0 }
 0x77b   :  { %v1651_v15 = vadd.f32 %v2072_v14, %v1846_v13  ;;  %v1645_v16 = vpop.f32.mrb[21].mxu0 }
 0x77c   :  { %v1646_v17 = vadd.f32 %v1846_v13, %v1645_v16 }
 0x77d   :  { %v1655_v20 = vmax.f32 %v1651_v15, 0.0 }
 0x77e   :  { %v1654_v19 = vmax.f32 %v1646_v17, 0.0 }
 0x780   :  { %2105 = vmatprep.mubr.f32.mxu1 %v1654_v19 }
 0x781   :  { %2106 = vmatmul.mubr.f32.vlgmr.msra.gmra.mrb[12].mxu1 %v1655_v20 }
 0x854   :  { %v2107_v21 = vpop.f32.mrb[12].mxu1 }
 0x855   :  { %v1751_v22 = vadd.f32 %v2107_v21, %v1849_v31  ;;  %v1745_v23 = vpop.f32.mrb[13].mxu1 }
 0x856   :  { %v1746_v24 = vadd.f32 %v1849_v31, %v1745_v23 }
 0x857   :  { %v1755_v25 = vadd.f32 %v1751_v22, %v1561_v34 }
 0x858   :  { %v1754_v26 = vadd.f32 %v1746_v24, %v1560_v9 }
 0x859   :  { %v1759_v27 = vsel %vm56_vm0, %v1755_v25, 0.0 }
 0x85a   :  { %1760 = vadd.xlane.f32.xlu0 %v1759_v27  ;;  %v1756_v29 = vsel %vm56_vm0, %v1754_v26, 0.0 }
 0x85b   :  { %1757 = vadd.xlane.f32.xlu1 %v1756_v29 }
 0x8e7   :  { %v1761_v18 = vpop.xlane.xlu0 %1760 }
 0x8e8   :  { %v1763_v5 = vmul.f32 0.03125, %v1761_v18  ;;  %v1758_v30 = vpop.xlane.xlu1 %1757 }
 0x8e9   :  { %v1762_v32 = vmul.f32 0.03125, %v1758_v30 }
 0x8ea   :  { %v1765_v33 = vsub.f32 %v1755_v25, %v1763_v5 }
 0x8eb   :  { %v1764_v35 = vsub.f32 %v1754_v26, %v1762_v32 }
 0x8ec   :  { %v1767_v36 = vmul.f32 %v1765_v33, %v1765_v33 }
 0x8ed   :  { %v1766_v38 = vmul.f32 %v1764_v35, %v1764_v35 }
 0x8ee   :  { %v1771_v39 = vsel %vm56_vm0, %v1767_v36, 0.0 }
 0x8ef   :  { %1772 = vadd.xlane.f32.xlu0 %v1771_v39  ;;  %v1768_v40 = vsel %vm56_vm0, %v1766_v38, 0.0 }
 0x8f0   :  { %1769 = vadd.xlane.f32.xlu1 %v1768_v40 }
 0x97c   :  { %v1773_v41 = vpop.xlane.xlu0 %1772 }
 0x97d   :  { %v1775_v42 = vmul.f32 0.03125, %v1773_v41  ;;  %v1770_v43 = vpop.xlane.xlu1 %1769 }
 0x97e   :  { %v1774_v44 = vmul.f32 0.03125, %v1770_v43 }
 0x97f   :  { %v1777_v45 = vadd.f32 1e-05, %v1775_v42 }
 0x980   :  { %v1776_v28 = vadd.f32 1e-05, %v1774_v44 }
 0x981   :  { %2301 = vrsqrt.f32 %v1777_v45 }
 0x982   :  { %2303 = vrsqrt.f32 %v1776_v28 }
 0x98b   :  { %v2302_v46 = vpop.eup %2301 }
 0x98c   :  { %v2304_v47 = vpop.eup %2303  ;;  %v1781_v48 = vmul.f32 %v2302_v46, %v1765_v33 }
 0x98d   :  { %v1780_v49 = vmul.f32 %v2304_v47, %v1764_v35 }
 0x98e   :  { %v1783_v50 = vmul.f32 %v2658_v2, %v1781_v48 }
 0x98f   :  { %v1782_v51 = vmul.f32 %v2658_v2, %v1780_v49 }
 0x990   :  { %v1785_v52 = vadd.f32 %v2663_v4, %v1783_v50 }
 0x991   :  { %v1784_v53 = vadd.f32 %v2663_v4, %v1782_v51 }
 0x992   :  { %1787 = vst.msk [vmem:[#allocation2 + $0x8] sm:$0xff] %vm56_vm0, %v1785_v52 }
 0x993   :  { %1786 = vst.msk [vmem:[#allocation2] sm:$0xff] %vm56_vm0, %v1784_v53 }
 0x994   :  { %2316 = shalt.err (!%p2313_p4)
}
 0x995   :  { %s2317_s18 = scalar_lea.hbm %s2716_s10, 256 }
 0x996   :  { %p2318_p5 = scmp.ne.s32.totalorder %s2716_s10, %s2317_s18  ;;  %p2321_p6 = scmp.lt.u32.totalorder %s2317_s18, %s2716_s10 }
 0x998   :  { %p2323_p7 = pnand %p2321_p6, %p2318_p5 }
 0x99a   :  { %2326 = shalt.err (!%p2323_p7)
}
 0x99b   :  { %s2332_s22 = smov 128   ;;  %s2333_s23 = smov 8  }
 0x99c   :  { %1799 = dma.vmem_to_hbm [thread:$0]  %s1794_s8, 256, %s2716_s10, [#allocation3], %s2332_s22, %s2332_s22, %s2333_s23  }
 0x99d   :  { %2327 = dma.done.wait [#allocation3], 256  }
 0x99e   :  { %2328 = vsyncadd [#allocation3], 4294967040 }
 0x99f   :  { %1803 = vsyncpa [#allocation3], 1 }

</bundles_post_ra>
